<compile_context>
chip_gen: v7x
topology: tpu7x:2x2x1
jax: 0.10.0
libtpu: 0.0.40
codegen_flags: <defaults>
</compile_context>

<pallas_src>
import jax
import jax.numpy as jnp
from jax.experimental import pallas as pl
from jax.experimental.pallas import tpu as pltpu


def _round_up(n, mult):
    return pl.cdiv(n, mult) * mult


def _sublane(dtype):
    return {4: 8, 2: 16, 1: 32}.get(jnp.dtype(dtype).itemsize, 8)


def _linear_logsoftmax_kernel(x_ref, w_ref, b_ref, o_ref, acc_ref):
    # x_ref: (bm, tk)   w_ref: (tk, O_pad)   b_ref: (1, O_pad)
    # o_ref: (bm, O_pad)   acc_ref: (bm, O_pad) f32 scratch
    k = pl.program_id(1)

    @pl.when(k == 0)
    def _():
        acc_ref[...] = jnp.zeros_like(acc_ref)

    # Native-dtype operands straight to the MXU; f32 accumulation.
    acc_ref[...] += jnp.dot(x_ref[...], w_ref[...],
                            preferred_element_type=jnp.float32)

    @pl.when(k == pl.num_programs(1) - 1)
    def _():
        logits = acc_ref[...] + b_ref[...].astype(jnp.float32)   # (bm, O_pad)
        m = jnp.max(logits, axis=1, keepdims=True)
        shifted = logits - m
        lse = jnp.log(jnp.sum(jnp.exp(shifted), axis=1, keepdims=True))
        o_ref[...] = (shifted - lse).astype(o_ref.dtype)


class AttnClassifierHead:
    """`self.out` + log_softmax of AttnClassifier; parameters padded once."""

    _W_TILE_BUDGET = 4 << 20    # ~4 MiB per (double-buffered) weight tile
    _ACC_BUDGET = 24 << 20      # budget for f32 accumulator + output buffers

    def __init__(self, out_weight, out_bias, *, block_b=256):
        O, H = out_weight.shape
        self.O, self.H = O, H
        self.block_b = block_b

        w_item = jnp.dtype(out_weight.dtype).itemsize
        O_pad = _round_up(O, 128)                     # lane-dense class axis

        # K (=H) tile: one full-H block when it fits the weight-tile budget,
        # otherwise a multiple of 128 keeping (tk, O_pad) within budget.
        tk_max = (self._W_TILE_BUDGET // max(1, O_pad * w_item)) // 128 * 128
        tk_max = max(128, min(2048, tk_max))
        if H <= tk_max:
            tk, H_pad = H, H
        else:
            tk = tk_max
            H_pad = _round_up(H, tk)
        self.O_pad, self.H_pad, self.tk = O_pad, H_pad, tk

        # Pad + transpose ONCE at init (hoisted out of the per-call path):
        # (O, H) -> (H_pad, O_pad), MXU-natural layout for x @ w.
        w = jnp.asarray(out_weight).T                               # (H, O)
        w = jnp.pad(w, ((0, H_pad - H), (0, O_pad - O)))
        b = jnp.asarray(out_bias).reshape(1, O)
        # Padded classes get a huge negative bias so they vanish from the
        # max / logsumexp (logits stay f32 in-kernel, so -1e30 is safe).
        b = jnp.pad(b, ((0, 0), (0, O_pad - O)), constant_values=-1e30)
        self.w_pad, self.b_pad = w, b

    def __call__(self, encoder_hidden, encoder_outputs=None, attn_mask=None):
        """encoder_hidden: (1, B, H) -> (B, O) log-probabilities.

        encoder_outputs / attn_mask are accepted for signature parity with the
        PyTorch module; its forward never uses them.
        """
        del encoder_outputs, attn_mask                # unused by the reference
        _, B, H = encoder_hidden.shape
        assert H == self.H, "hidden size mismatch with prepared parameters"
        O, O_pad, H_pad, tk = self.O, self.O_pad, self.H_pad, self.tk

        x_dtype = encoder_hidden.dtype
        x_item = jnp.dtype(x_dtype).itemsize
        w_item = jnp.dtype(self.w_pad.dtype).itemsize
        b_item = jnp.dtype(self.b_pad.dtype).itemsize
        out_item = x_item
        sub = _sublane(x_dtype)

        # Batch tile: sublane-packed, VMEM-budgeted, and (when the batch
        # allows) split so v7x's two TensorCores both get a "parallel" step.
        bm = min(_round_up(self.block_b, sub), _round_up(B, sub))
        bm_cap = (self._ACC_BUDGET // max(1, O_pad * (4 + 2 * out_item)))
        bm_cap = max(sub, bm_cap // sub * sub)
        bm = min(bm, bm_cap)
        if B > sub and _round_up(B, sub) // bm < 2:
            half = _round_up(pl.cdiv(bm, 2), sub)
            if half < bm:
                bm = half
        B_pad = _round_up(B, bm)

        x3 = encoder_hidden
        if B_pad != B or H_pad != H:                  # cheap activation pad
            x3 = jnp.pad(x3, ((0, 0), (0, B_pad - B), (0, H_pad - H)))

        num_b = B_pad // bm
        num_k = H_pad // tk
        grid = (num_b, num_k)

        cost = pl.CostEstimate(
            flops=2 * B_pad * H_pad * O_pad,
            transcendentals=B_pad * (O_pad + 1),      # exp per logit + log
            bytes_accessed=(B_pad * H_pad * x_item
                            + H_pad * O_pad * w_item * (num_b if num_k > 1 else 1)
                            + O_pad * b_item
                            + B_pad * O_pad * out_item),
        )

        vmem_needed = (2 * bm * tk * x_item           # x double-buffer
                       + 2 * tk * O_pad * w_item      # weight double-buffer
                       + 2 * O_pad * b_item           # bias
                       + 2 * bm * O_pad * out_item    # output double-buffer
                       + bm * O_pad * 4)              # f32 accumulator scratch
        vmem_limit = int(min(64 << 20, max(2 * vmem_needed, 16 << 20)))

        out = pl.pallas_call(
            _linear_logsoftmax_kernel,
            out_shape=jax.ShapeDtypeStruct((B_pad, O_pad), x_dtype),
            grid=grid,
            in_specs=[
                # (1, B_pad, H_pad): leading dim squeezed by the BlockSpec.
                pl.BlockSpec((None, bm, tk), lambda i, k: (0, i, k)),
                # Weight (H_pad, O_pad): K-tiled, pipelined against the matmul.
                pl.BlockSpec((tk, O_pad), lambda i, k: (k, 0)),
                # Bias: constant block index -> fetched once.
                pl.BlockSpec((1, O_pad), lambda i, k: (0, 0)),
            ],
            out_specs=pl.BlockSpec((bm, O_pad), lambda i, k: (i, 0)),
            scratch_shapes=[pltpu.VMEM((bm, O_pad), jnp.float32)],
            compiler_params=pltpu.CompilerParams(
                dimension_semantics=("parallel", "arbitrary"),
                vmem_limit_bytes=vmem_limit),
            cost_estimate=cost,
        )(x3, self.w_pad, self.b_pad)

        return out[:B, :O]


if __name__ == "__main__":
    key = jax.random.PRNGKey(0)
    k_h, k_eo, k_w, k_b = jax.random.split(key, 4)

    batch = 8
    seq = 8
    hidden_size = 32
    output_size = 16

    # Inputs mirroring the PyTorch module's expected shapes.
    encoder_hidden = jax.random.normal(k_h, (1, batch, hidden_size), jnp.float32)
    encoder_outputs = jax.random.normal(k_eo, (seq, batch, hidden_size), jnp.float32)
    attn_mask = jnp.zeros((batch, seq), dtype=bool)

    # Deterministic "self.out" Linear(hidden_size, output_size) parameters.
    bound = 1.0 / (hidden_size ** 0.5)
    out_weight = jax.random.uniform(
        k_w, (output_size, hidden_size), jnp.float32, -bound, bound)
    out_bias = jax.random.uniform(
        k_b, (output_size,), jnp.float32, -bound, bound)

    # Weight/bias are padded + transposed once here (not per call).
    head = AttnClassifierHead(out_weight, out_bias)
    fwd = jax.jit(head.__call__)
    result = fwd(encoder_hidden, encoder_outputs, attn_mask)
    result = jax.block_until_ready(result)

    # Sanity check against a pure-JAX reference of the same forward.
    ref_logits = jnp.squeeze(encoder_hidden, 0) @ out_weight.T + out_bias
    ref = jax.nn.log_softmax(ref_logits, axis=1)
    assert result.shape == (batch, output_size)
    assert jnp.allclose(result, ref, atol=1e-5), "mismatch vs reference"

    print("KERNEL_OK")
</pallas_src>

<mosaic_0001>
module attributes {stable_mosaic.version = 11 : i64} {
  func.func @_linear_logsoftmax_kernel(%arg0: i32, %arg1: i32, %arg2: memref<1x8x32xf32, #tpu.memory_space<vmem>>, %arg3: memref<32x128xf32, #tpu.memory_space<vmem>>, %arg4: memref<1x128xf32, #tpu.memory_space<vmem>>, %arg5: memref<8x128xf32, #tpu.memory_space<vmem>>, %arg6: memref<8x128xf32, #tpu.memory_space<vmem>>) attributes {dimension_semantics = [#tpu.dimension_semantics<parallel>, #tpu.dimension_semantics<arbitrary>], iteration_bounds = array<i64: 1, 1>, scalar_prefetch = 0 : i64, scratch_operands = 1 : i64, tpu.core_type = #tpu.core_type<tc>, window_params = [{transform_indices = @transform_0, window_bounds = array<i64: 1, 8, 32>}, {transform_indices = @transform_1, window_bounds = array<i64: 32, 128>}, {pipeline_mode = #tpu.pipeline_mode<synchronous>, transform_indices = @transform_2, window_bounds = array<i64: 1, 128>}, {transform_indices = @transform_3, window_bounds = array<i64: 8, 128>}]} {
    %c0_i32 = arith.constant 0 : i32
    %0 = arith.cmpi eq, %arg1, %c0_i32 : i32
    %1 = arith.extui %0 : i1 to i32
    %c0_i32_0 = arith.constant 0 : i32
    %2 = arith.cmpi ne, %1, %c0_i32_0 : i32
    scf.if %2 {
      %cst_11 = arith.constant 0.000000e+00 : f32
      %13 = vector.broadcast %cst_11 : f32 to vector<8x128xf32>
      %c0_12 = arith.constant 0 : index
      %c0_13 = arith.constant 0 : index
      %14 = vector.load %arg6[%c0_12, %c0_13] : memref<8x128xf32, #tpu.memory_space<vmem>>, vector<8x128xf32>
      tpu.vector_store %arg6[%c0_12, %c0_13], %13 {strides = array<i32>} : memref<8x128xf32, #tpu.memory_space<vmem>>, vector<8x128xf32>,
    } else {
    }
    %c0 = arith.constant 0 : index
    %c0_1 = arith.constant 0 : index
    %3 = vector.load %arg6[%c0, %c0_1] : memref<8x128xf32, #tpu.memory_space<vmem>>, vector<8x128xf32>
    %c0_2 = arith.constant 0 : index
    %c0_3 = arith.constant 0 : index
    %c0_4 = arith.constant 0 : index
    %4 = vector.load %arg2[%c0_2, %c0_3, %c0_4] : memref<1x8x32xf32, #tpu.memory_space<vmem>>, vector<1x8x32xf32>
    %5 = vector.shape_cast %4 : vector<1x8x32xf32> to vector<8x32xf32>
    %c0_5 = arith.constant 0 : index
    %c0_6 = arith.constant 0 : index
    %6 = vector.load %arg3[%c0_5, %c0_6] : memref<32x128xf32, #tpu.memory_space<vmem>>, vector<32x128xf32>
    %cst = arith.constant dense<0.000000e+00> : vector<8x128xf32>
    %7 = tpu.matmul %5, %6, %cst {dimension_numbers = #tpu.dot_dimension_numbers<[1], [0], [0], [1], [0, 0, 1, 1], [], []>} : vector<8x32xf32>, vector<32x128xf32>, vector<8x128xf32> -> vector<8x128xf32>
    %8 = arith.addf %3, %7 : vector<8x128xf32>
    %c0_7 = arith.constant 0 : index
    %c0_8 = arith.constant 0 : index
    %9 = vector.load %arg6[%c0_7, %c0_8] : memref<8x128xf32, #tpu.memory_space<vmem>>, vector<8x128xf32>
    tpu.vector_store %arg6[%c0_7, %c0_8], %8 {strides = array<i32>} : memref<8x128xf32, #tpu.memory_space<vmem>>, vector<8x128xf32>,
    %c0_i32_9 = arith.constant 0 : i32
    %10 = arith.cmpi eq, %arg1, %c0_i32_9 : i32
    %11 = arith.extui %10 : i1 to i32
    %c0_i32_10 = arith.constant 0 : i32
    %12 = arith.cmpi ne, %11, %c0_i32_10 : i32
    scf.if %12 {
      %c0_11 = arith.constant 0 : index
      %c0_12 = arith.constant 0 : index
      %13 = vector.load %arg6[%c0_11, %c0_12] : memref<8x128xf32, #tpu.memory_space<vmem>>, vector<8x128xf32>
      %c0_13 = arith.constant 0 : index
      %c0_14 = arith.constant 0 : index
      %14 = vector.load %arg4[%c0_13, %c0_14] : memref<1x128xf32, #tpu.memory_space<vmem>>, vector<1x128xf32>
      %15 = vector.broadcast %14 : vector<1x128xf32> to vector<8x128xf32>
      %16 = arith.addf %13, %15 : vector<8x128xf32>
      %cst_15 = arith.constant dense<0xFF800000> : vector<8xf32>
      %17 = vector.multi_reduction <maximumf>, %16, %cst_15 [1] : vector<8x128xf32> to vector<8xf32>
      %18 = vector.shape_cast %17 : vector<8xf32> to vector<8x1xf32>
      %19 = vector.broadcast %18 : vector<8x1xf32> to vector<8x128xf32>
      %20 = arith.subf %16, %19 : vector<8x128xf32>
      %21 = math.exp %20 : vector<8x128xf32>
      %cst_16 = arith.constant dense<0.000000e+00> : vector<8xf32>
      %22 = vector.multi_reduction <add>, %21, %cst_16 [1] : vector<8x128xf32> to vector<8xf32>
      %23 = vector.shape_cast %22 : vector<8xf32> to vector<8x1xf32>
      %24 = math.log %23 : vector<8x1xf32>
      %25 = vector.broadcast %24 : vector<8x1xf32> to vector<8x128xf32>
      %26 = arith.subf %20, %25 : vector<8x128xf32>
      %c0_17 = arith.constant 0 : index
      %c0_18 = arith.constant 0 : index
      %27 = vector.load %arg5[%c0_17, %c0_18] : memref<8x128xf32, #tpu.memory_space<vmem>>, vector<8x128xf32>
      tpu.vector_store %arg5[%c0_17, %c0_18], %26 {strides = array<i32>} : memref<8x128xf32, #tpu.memory_space<vmem>>, vector<8x128xf32>,
    } else {
    }
    return
  }
  func.func @transform_0(%arg0: i32, %arg1: i32) -> (i32, i32, i32) {
    %c0_i32 = arith.constant 0 : i32
    %c0_i32_0 = arith.constant 0 : i32
    return %c0_i32, %arg0, %arg1 : i32, i32, i32
  }
  func.func @transform_1(%arg0: i32, %arg1: i32) -> (i32, i32) {
    %c0_i32 = arith.constant 0 : i32
    %c0_i32_0 = arith.constant 0 : i32
    return %arg1, %c0_i32 : i32, i32
  }
  func.func @transform_2(%arg0: i32, %arg1: i32) -> (i32, i32) {
    %c0_i32 = arith.constant 0 : i32
    %c0_i32_0 = arith.constant 0 : i32
    %c0_i32_1 = arith.constant 0 : i32
    return %c0_i32, %c0_i32_0 : i32, i32
  }
  func.func @transform_3(%arg0: i32, %arg1: i32) -> (i32, i32) {
    %c0_i32 = arith.constant 0 : i32
    %c0_i32_0 = arith.constant 0 : i32
    return %arg0, %c0_i32 : i32, i32
  }
}

</mosaic_0001>

<bundles_post_ra>
// kernel: a_call__.1
= control target key start
LH: loop header
LB: loop body
LE: loop exit
PB: predicated region body
PF: predicated region fallthrough
CT: control target
= control target key end

     0   :  { %8 = vsyncpa [#allocation4], 0  ;;  %s349_s0 = inlined_call_operand.hbm [shape: f32[1,8,32], index: 0, kind: input, shape index: {}]   ;;  %s350_s1 = inlined_call_operand.hbm [shape: f32[32,128], index: 1, kind: input, shape index: {}]   ;;  %s351_s2 = inlined_call_operand.vmem [shape: f32[1,128], index: 2, kind: input, shape index: {}]   ;;  %s352_s3 = inlined_call_operand.hbm [shape: f32[8,128], index: 3, kind: output, shape index: {}]  }
   0x1   :  { %9 = vsyncpa [#allocation7], 0 }
   0x2   :  { %10 = vsyncpa [#allocation5], 0  ;;  %s275_s12 = smov [#allocation3]   ;;  %s276_s14 = smov [#allocation6]  }
   0x3   :  { %s17_s13 = sshll.u32 %s275_s12, 4  ;;  %s26_s15 = sshll.u32 %s276_s14, 4  ;;  %s18_s13 = int_to_ptr.vmem [resolvable:$true] %s17_s13  ;;  %s303_s15 = int_to_ptr.vmem [resolvable:$true] %s26_s15 }
   0x4   :  { %s203_s18 = scalar_lea.hbm %s349_s0, 128 }
   0x5   :  { %p204_p0 = scmp.ne.s32.totalorder %s349_s0, %s203_s18  ;;  %p207_p1 = scmp.lt.u32.totalorder %s203_s18, %s349_s0 }
   0x7   :  { %p209_p2 = pnand %p207_p1, %p204_p0 }
   0x9   :  { %212 = shalt.err (!%p209_p2)
}
   0xa   :  { %s213_s23 = scalar_lea.vmem %s18_s13, 128  ;;  %p218_p4 = scmp.lt.s32.totalorder %s18_s13, %s18_s13 }
   0xb   :  { %p214_p3 = scmp.ne.s32.totalorder %s18_s13, %s213_s23  ;;  %p219_p5 = scmp.lt.s32.totalorder %s213_s23, %s213_s23 }
   0xd   :  { %p220_p6 = por %p219_p5, %p218_p4 }
   0xf   :  { %p221_p7 = pnand %p220_p6, %p214_p3 }
  0x11   :  { %224 = shalt.err (!%p221_p7)
}
  0x12   :  { %20 = dma.hbm_to_vmem [thread:$0]  %s349_s0, 128, %s18_s13, [#allocation4]  }
  0x13   :  { %s225_s28 = scalar_lea.hbm %s350_s1, 512 }
  0x14   :  { %p226_p8 = scmp.ne.s32.totalorder %s350_s1, %s225_s28  ;;  %p229_p9 = scmp.lt.u32.totalorder %s225_s28, %s350_s1 }
  0x16   :  { %p231_p10 = pnand %p229_p9, %p226_p8 }
  0x18   :  { %234 = shalt.err (!%p231_p10)
}
  0x19   :  { %s235_s6 = scalar_lea.vmem %s303_s15, 512  ;;  %p240_p12 = scmp.lt.s32.totalorder %s303_s15, %s303_s15 }
  0x1a   :  { %p236_p11 = scmp.ne.s32.totalorder %s303_s15, %s235_s6  ;;  %p241_p13 = scmp.lt.s32.totalorder %s235_s6, %s235_s6 }
  0x1c   :  { %p242_p0 = por %p241_p13, %p240_p12 }
  0x1e   :  { %p243_p1 = pnand %p242_p0, %p236_p11 }
  0x20   :  { %246 = shalt.err (!%p243_p1)
}
  0x21   :  { %s277_s0 = smov 128   ;;  %s278_s7 = smov 8  }
  0x22   :  { %32 = dma.hbm_to_vmem [thread:$0]  %s350_s1, 512, %s303_s15, [#allocation7], %s277_s0, %s277_s0, %s278_s7  }
  0x23   :  { %269 = dma.done.wait [#allocation4], 128  }
  0x24   :  { %270 = vsyncadd [#allocation4], 4294967168 }
  0x25   :  { %271 = dma.done.wait [#allocation7], 512  }
  0x26   :  { %272 = vsyncadd [#allocation7], 4294966784  ;;  %v279_v0 = vmov 0.0|0.0   ;;  %vm280_vm0 = vmmov 0   ;;  %v281_v1 = vmov 0.0   ;;  %v48_v2 = vld [vmem:[#allocation6] sm:$0xff] }
  0x27   :  { %185 = vmatprep.subr.bf16.mxu0 %v279_v0  ;;  %182 = vmatprep.mubr.msk.f32.mxu0 %vm280_vm0, %v281_v1  ;;  %v49_v3 = vld [vmem:[#allocation6 + $0x8] sm:$0xff]  ;;  %v50_v4 = vld [vmem:[#allocation6 + $0x10] sm:$0xff]  ;;  %v51_v6 = vld [vmem:[#allocation6 + $0x18] sm:$0xff]  ;;  %vm52_vm1 = vcmask 261120   ;;  %s282_s11 = smov [#allocation8]  }
  0x28   :  { %v186_v5 = vpack.c.bf16 %v49_v3, %v48_v2  ;;  %v189_v7 = vpack.c.bf16 %v51_v6, %v50_v4  ;;  %v47_v8 = vld [vmem:[#allocation3] sm:$0xff]  ;;  %s157_s12 = sshll.u32 %s282_s11, 4  ;;  %s158_s12 = int_to_ptr.vmem [resolvable:$true] %s157_s12 }
  0x29   :  { %v168_v9 = vld [vmem:[%s351_s2] ss:$0 sm:$0xff]  ;;  %s247_s2 = scalar_lea.vmem %s158_s12, 128  ;;  %p252_p3 = scmp.lt.s32.totalorder %s158_s12, %s158_s12 }
  0x2a   :  { %187 = vmatpush3.bf16.msra.mxu0 %v186_v5  ;;  %p248_p2 = scmp.ne.s32.totalorder %s158_s12, %s247_s2  ;;  %p253_p4 = scmp.lt.s32.totalorder %s247_s2, %s247_s2 }
  0x2b   :  { %188 = vmatprep.subr.bf16.mxu0 %v279_v0 }
  0x2c   :  { %p254_p5 = por %p253_p4, %p252_p3 }
  0x2e   :  { %190 = vmatpush3.bf16.msra.mxu0 %v189_v7  ;;  %p255_p6 = pnand %p254_p5, %p248_p2 }
  0x31   :  { %183 = vmatmul.mubr.msk.f32.vlgmr.msra.gmra.mrb[0].mxu0 %vm52_vm1, %v47_v8 }
 0x104   :  { %v122_v10 = vpop.f32.mrb[0].mxu0 }
 0x105   :  { %v139_v11 = vadd.f32 %v168_v9, %v122_v10  ;;  %v184_v12 = vpop.f32.mrb[1].mxu0 }
 0x107   :  { %140 = vmax.xlane.f32.xlu0 %v139_v11 }
 0x194   :  { %v141_v13 = vpop.xlane.xlu0 %140 }
 0x195   :  { %v142_v14 = vsub.f32 %v139_v11, %v141_v13 }
 0x197   :  { %v143_v15 = vmul.f32 1.442695, %v142_v14 }
 0x199   :  { %199 = vpow2.f32 %v143_v15 }
 0x1a3   :  { %v200_v16 = vpop.eup %199 }
 0x1a4   :  { %145 = vadd.xlane.f32.xlu0 %v200_v16 }
 0x231   :  { %v146_v17 = vpop.xlane.xlu0 %145 }
 0x232   :  { %201 = vlog2.f32 %v146_v17 }
 0x23c   :  { %v202_v18 = vpop.eup %201 }
 0x23d   :  { %v148_v19 = vmul.f32 0.6931472, %v202_v18 }
 0x23f   :  { %v149_v20 = vsub.f32 %v142_v14, %v148_v19 }
 0x241   :  { %150 = vst [vmem:[#allocation8] sm:$0xff] %v149_v20 }
 0x242   :  { %258 = shalt.err (!%p255_p6)
}
 0x243   :  { %s259_s15 = scalar_lea.hbm %s352_s3, 128 }
 0x244   :  { %p260_p7 = scmp.ne.s32.totalorder %s352_s3, %s259_s15  ;;  %p263_p8 = scmp.lt.u32.totalorder %s259_s15, %s352_s3 }
 0x246   :  { %p265_p9 = pnand %p263_p8, %p260_p7 }
 0x248   :  { %268 = shalt.err (!%p265_p9)
}
 0x249   :  { %160 = dma.vmem_to_hbm [thread:$0]  %s158_s12, 128, %s352_s3, [#allocation5]  }
 0x24a   :  { %273 = dma.done.wait [#allocation5], 128  }
 0x24b   :  { %274 = vsyncadd [#allocation5], 4294967168 }
 0x24c   :  { %164 = vsyncpa [#allocation4], 1 }
 0x24d   :  { %165 = vsyncpa [#allocation7], 1 }
 0x24e   :  { %166 = vsyncpa [#allocation5], 1 }

</bundles_post_ra>
